<compile_context>
chip_gen: v5e
topology: v5e:2x2
jax: 0.10.0
libtpu: 0.0.40
codegen_flags: <defaults>
</compile_context>

<pallas_src>
import jax
import jax.numpy as jnp
from jax.experimental import pallas as pl
from jax.experimental.pallas import tpu as pltpu

EPS = 1e-5


# ----------------------------------------------------------------------------
# Kernels
# ----------------------------------------------------------------------------

def _bn_tile_kernel(x_ref, o_ref):
    """Full-N feature tile, gamma=1 / beta=0 specialization (module default)."""
    x = x_ref[...].astype(jnp.float32)              # (N, TC)
    inv_n = 1.0 / x.shape[0]
    mean = jnp.sum(x, axis=0, keepdims=True) * inv_n        # (1, TC)
    xc = x - mean
    var = jnp.sum(xc * xc, axis=0, keepdims=True) * inv_n   # two-pass: stable
    inv_std = jax.lax.rsqrt(var + EPS)
    o_ref[...] = (xc * inv_std).astype(o_ref.dtype)


def _bn_tile_affine_kernel(x_ref, g_ref, b_ref, o_ref):
    """Full-N feature tile, general affine path."""
    x = x_ref[...].astype(jnp.float32)              # (N, TC)
    inv_n = 1.0 / x.shape[0]
    mean = jnp.sum(x, axis=0, keepdims=True) * inv_n
    xc = x - mean
    var = jnp.sum(xc * xc, axis=0, keepdims=True) * inv_n
    inv_std = jax.lax.rsqrt(var + EPS)
    scale = g_ref[...].astype(jnp.float32) * inv_std
    o_ref[...] = (xc * scale + b_ref[...].astype(jnp.float32)).astype(o_ref.dtype)


def _bn_stats_kernel(x_ref, s1_out, s2_out, s1_acc, s2_acc):
    """Pass 1 of the N-tiled path: accumulate per-feature sum / sum-of-squares
    across batch tiles (grid axis 1 is the "arbitrary" reduction axis)."""
    @pl.when(pl.program_id(1) == 0)
    def _():
        s1_acc[...] = jnp.zeros_like(s1_acc)
        s2_acc[...] = jnp.zeros_like(s2_acc)

    x = x_ref[...].astype(jnp.float32)              # (TN, TC)
    # TODO(synk): for very wide (TN, TC) tiles the x*x temporary could be
    # avoided by offloading both N-reductions to the idle MXU row-chunk-wise.
    s1_acc[...] += jnp.sum(x, axis=0, keepdims=True)
    s2_acc[...] += jnp.sum(x * x, axis=0, keepdims=True)

    @pl.when(pl.program_id(1) == pl.num_programs(1) - 1)
    def _():
        s1_out[...] = s1_acc[...]
        s2_out[...] = s2_acc[...]


def _bn_apply_kernel(x_ref, scale_ref, shift_ref, o_ref):
    """Pass 2 of the N-tiled path: streaming y = x * scale + shift."""
    x = x_ref[...].astype(jnp.float32)
    o_ref[...] = (x * scale_ref[...] + shift_ref[...]).astype(o_ref.dtype)


# ----------------------------------------------------------------------------
# Tiling / budget helpers
# ----------------------------------------------------------------------------

def _vmem_capacity_bytes():
    """Per-TensorCore VMEM capacity; conservative (v7x) fallback if unknown."""
    try:
        info = pltpu.get_tpu_info()
        for name in ("vmem_capacity_bytes", "vmem_bytes", "vmem_size_bytes"):
            v = getattr(info, name, None)
            if v:
                return int(v)
    except Exception:
        pass
    return 64 << 20


def _streaming_footprint(rows, cols, in_bytes, out_bytes):
    # Double-buffered in + out blocks, plus single-buffered f32 temporaries
    # (upcast copy + centered copy / x*x product).
    return 2 * rows * cols * (in_bytes + out_bytes) + 2 * rows * cols * 4


def _compiler_params(semantics, footprint, cap):
    limit = int(min(max(2 * footprint, 32 << 20), cap * 3 // 4))
    return pltpu.CompilerParams(dimension_semantics=semantics,
                                vmem_limit_bytes=limit)


def _choose_feature_tile(n, c, in_bytes, out_bytes, budget):
    """Largest lane-dense feature tile TC (multiple of 128 dividing C, or the
    full extent C) whose streaming footprint with the full batch fits `budget`.
    Prefers an even tile count (>=2) so v7x's two TCs split the parallel axis
    evenly. Returns None when even TC=128 does not fit (=> N-tiled path)."""
    def fits(tc):
        return _streaming_footprint(n, tc, in_bytes, out_bytes) <= budget

    if fits(c):
        return c                      # single full-extent block: grid=(1,)
    if c % 128 != 0:
        return None                   # cannot lane-tile a non-aligned C
    cands = [tc for tc in range(128, c, 128) if c % tc == 0 and fits(tc)]
    if not cands:
        return None
    even = [tc for tc in cands if (c // tc) % 2 == 0]
    return max(even) if even else max(cands)


def _choose_batch_tiles(n, c, in_bytes, out_bytes, budget):
    """(TN, TC) for the N-tiled path: TN a multiple of 8 dividing N, TC a
    multiple of 128 dividing C (or full C), maximizing block area in budget."""
    tcs = ([tc for tc in range(128, c + 1, 128) if c % tc == 0]
           if c % 128 == 0 else [c])
    tns = [tn for tn in range(8, n, 8) if n % tn == 0]
    if not tns:
        return None
    best = None
    for tc in tcs:
        fit = [tn for tn in tns
               if _streaming_footprint(tn, tc, in_bytes, out_bytes) <= budget]
        if fit:
            tn = max(fit)
            if best is None or tn * tc > best[0] * best[1]:
                best = (tn, tc)
    return best


# ----------------------------------------------------------------------------
# Forward paths
# ----------------------------------------------------------------------------

def _bn_feature_tiled(x, gamma, beta, tc, cap):
    n, c = x.shape
    assert c % tc == 0
    grid = (c // tc,)
    fp = _streaming_footprint(n, tc, x.dtype.itemsize, x.dtype.itemsize)
    params = _compiler_params(("parallel",), fp, cap)

    if gamma is None and beta is None:
        # Module default: gamma=1, beta=0 (frozen) -> no param DMAs at all.
        return pl.pallas_call(
            _bn_tile_kernel,
            out_shape=jax.ShapeDtypeStruct((n, c), x.dtype),
            grid_spec=pltpu.PrefetchScalarGridSpec(
                num_scalar_prefetch=0,
                grid=grid,
                in_specs=[pl.BlockSpec((n, tc), lambda j: (0, j))],
                out_specs=pl.BlockSpec((n, tc), lambda j: (0, j)),
            ),
            compiler_params=params,
        )(x)

    g = (jnp.ones((c,), jnp.float32) if gamma is None else gamma).reshape(1, c)
    b = (jnp.zeros((c,), jnp.float32) if beta is None else beta).reshape(1, c)
    return pl.pallas_call(
        _bn_tile_affine_kernel,
        out_shape=jax.ShapeDtypeStruct((n, c), x.dtype),
        grid_spec=pltpu.PrefetchScalarGridSpec(
            num_scalar_prefetch=0,
            grid=grid,
            in_specs=[
                pl.BlockSpec((n, tc), lambda j: (0, j)),
                pl.BlockSpec((1, tc), lambda j: (0, j)),
                pl.BlockSpec((1, tc), lambda j: (0, j)),
            ],
            out_specs=pl.BlockSpec((n, tc), lambda j: (0, j)),
        ),
        compiler_params=params,
    )(x, g, b)


def _bn_batch_tiled(x, gamma, beta, cap, budget):
    """Large-batch path: streaming stats sweep + streaming normalize sweep."""
    n, c = x.shape
    tiles = _choose_batch_tiles(n, c, x.dtype.itemsize, x.dtype.itemsize, budget)
    if tiles is None:
        # TODO(synk): N has no multiple-of-8 divisor; fall back to the full-N
        # feature-tiled path (correct, may exceed the VMEM budget).
        return _bn_feature_tiled(x, gamma, beta, 128 if c % 128 == 0 else c, cap)
    tn, tc = tiles
    nt_n, nt_c = n // tn, c // tc
    fp = _streaming_footprint(tn, tc, x.dtype.itemsize, x.dtype.itemsize)

    # Pass 1: per-feature sum and sum-of-squares (N axis = "arbitrary", last).
    s1, s2 = pl.pallas_call(
        _bn_stats_kernel,
        out_shape=(jax.ShapeDtypeStruct((1, c), jnp.float32),
                   jax.ShapeDtypeStruct((1, c), jnp.float32)),
        grid_spec=pltpu.PrefetchScalarGridSpec(
            num_scalar_prefetch=0,
            grid=(nt_c, nt_n),
            in_specs=[pl.BlockSpec((tn, tc), lambda j, i: (i, j))],
            out_specs=(pl.BlockSpec((1, tc), lambda j, i: (0, j)),
                       pl.BlockSpec((1, tc), lambda j, i: (0, j))),
            scratch_shapes=[pltpu.VMEM((1, tc), jnp.float32),
                            pltpu.VMEM((1, tc), jnp.float32)],
        ),
        compiler_params=_compiler_params(("parallel", "arbitrary"), fp, cap),
    )(x)

    # Fold mean/var/gamma/beta into one per-feature scale/shift (tiny, C-long).
    inv_n = 1.0 / n
    mean = s1 * inv_n
    var = jnp.maximum(s2 * inv_n - mean * mean, 0.0)
    inv_std = jax.lax.rsqrt(var + EPS)
    g = jnp.ones((1, c), jnp.float32) if gamma is None else gamma.astype(jnp.float32).reshape(1, c)
    b = jnp.zeros((1, c), jnp.float32) if beta is None else beta.astype(jnp.float32).reshape(1, c)
    scale = g * inv_std
    shift = b - mean * scale

    # Pass 2: streaming y = x * scale + shift.
    return pl.pallas_call(
        _bn_apply_kernel,
        out_shape=jax.ShapeDtypeStruct((n, c), x.dtype),
        grid_spec=pltpu.PrefetchScalarGridSpec(
            num_scalar_prefetch=0,
            grid=(nt_c, nt_n),
            in_specs=[
                pl.BlockSpec((tn, tc), lambda j, i: (i, j)),
                pl.BlockSpec((1, tc), lambda j, i: (0, j)),
                pl.BlockSpec((1, tc), lambda j, i: (0, j)),
            ],
            out_specs=pl.BlockSpec((tn, tc), lambda j, i: (i, j)),
        ),
        compiler_params=_compiler_params(("parallel", "parallel"), fp, cap),
    )(x, scale, shift)


def bottleneck_forward(x, gamma=None, beta=None, *, vmem_budget=None):
    """BatchNorm1d forward with batch statistics.

    x: (N, C). gamma/beta: optional (C,) — the module's kaiming init freezes
    them at 1 / 0, so the default (None) takes the specialized no-affine path.
    """
    n, c = x.shape
    cap = _vmem_capacity_bytes()
    budget = vmem_budget if vmem_budget is not None else min(cap // 3, 48 << 20)
    in_b = out_b = x.dtype.itemsize

    tc = _choose_feature_tile(n, c, in_b, out_b, budget)
    if tc is not None:
        return _bn_feature_tiled(x, gamma, beta, tc, cap)
    return _bn_batch_tiled(x, gamma, beta, cap, budget)


# ----------------------------------------------------------------------------
# Reference + demo
# ----------------------------------------------------------------------------

def reference_bn1d(x, gamma, beta):
    mean = jnp.mean(x, axis=0, keepdims=True)
    var = jnp.mean((x - mean) ** 2, axis=0, keepdims=True)
    return (x - mean) / jnp.sqrt(var + EPS) * gamma.reshape(1, -1) + beta.reshape(1, -1)


if __name__ == "__main__":
    batch, feat_dim = 16, 384

    key = jax.random.PRNGKey(0)
    x = jax.random.normal(key, (batch, feat_dim), dtype=jnp.float32)

    # Module's actual parameters (weights_init_kaiming): gamma=1, beta=0,
    # bias frozen -> specialized path (whole array fits: grid=(1,), one block).
    out = jax.block_until_ready(bottleneck_forward(x))
    ref = reference_bn1d(x, jnp.ones((feat_dim,), jnp.float32),
                         jnp.zeros((feat_dim,), jnp.float32))
    assert out.shape == (batch, feat_dim)
    err = float(jnp.max(jnp.abs(out - ref)))
    assert err < 1e-4, err

    # General affine path (kept behind the gamma/beta args).
    kg, kb = jax.random.split(jax.random.PRNGKey(1))
    gamma = 1.0 + 0.1 * jax.random.normal(kg, (feat_dim,), dtype=jnp.float32)
    beta = 0.1 * jax.random.normal(kb, (feat_dim,), dtype=jnp.float32)
    out_a = jax.block_until_ready(bottleneck_forward(x, gamma, beta))
    ref_a = reference_bn1d(x, gamma, beta)
    err_a = float(jnp.max(jnp.abs(out_a - ref_a)))
    assert err_a < 1e-4, err_a

    # Large-batch (N-tiled, two-pass) path, exercised at a small shape by
    # forcing a tiny VMEM budget.
    x2 = jax.random.normal(jax.random.PRNGKey(2), (64, 256), dtype=jnp.float32)
    out_c = jax.block_until_ready(bottleneck_forward(x2, vmem_budget=32 * 1024))
    ref_c = reference_bn1d(x2, jnp.ones((256,), jnp.float32),
                           jnp.zeros((256,), jnp.float32))
    err_c = float(jnp.max(jnp.abs(out_c - ref_c)))
    assert err_c < 1e-4, err_c

    print("KERNEL_OK")
</pallas_src>

<mosaic_0001>
module attributes {stable_mosaic.version = 11 : i64} {
  func.func @_bn_tile_kernel(%arg0: i32, %arg1: memref<16x384xf32, #tpu.memory_space<vmem>>, %arg2: memref<16x384xf32, #tpu.memory_space<vmem>>) attributes {dimension_semantics = [#tpu.dimension_semantics<parallel>], iteration_bounds = array<i64: 1>, scalar_prefetch = 0 : i64, scratch_operands = 0 : i64, tpu.core_type = #tpu.core_type<tc>, window_params = [{transform_indices = @transform_0, window_bounds = array<i64: 16, 384>}, {transform_indices = @transform_1, window_bounds = array<i64: 16, 384>}]} {
    %c0 = arith.constant 0 : index
    %c0_0 = arith.constant 0 : index
    %0 = vector.load %arg1[%c0, %c0_0] : memref<16x384xf32, #tpu.memory_space<vmem>>, vector<16x384xf32>
    %cst = arith.constant dense<0.000000e+00> : vector<384xf32>
    %1 = vector.multi_reduction <add>, %0, %cst [0] : vector<16x384xf32> to vector<384xf32>
    %2 = vector.shape_cast %1 : vector<384xf32> to vector<1x384xf32>
    %cst_1 = arith.constant 6.250000e-02 : f32
    %3 = vector.broadcast %cst_1 : f32 to vector<1x384xf32>
    %4 = arith.mulf %2, %3 : vector<1x384xf32>
    %5 = vector.broadcast %4 : vector<1x384xf32> to vector<16x384xf32>
    %6 = arith.subf %0, %5 : vector<16x384xf32>
    %7 = arith.mulf %6, %6 : vector<16x384xf32>
    %cst_2 = arith.constant dense<0.000000e+00> : vector<384xf32>
    %8 = vector.multi_reduction <add>, %7, %cst_2 [0] : vector<16x384xf32> to vector<384xf32>
    %9 = vector.shape_cast %8 : vector<384xf32> to vector<1x384xf32>
    %cst_3 = arith.constant 6.250000e-02 : f32
    %10 = vector.broadcast %cst_3 : f32 to vector<1x384xf32>
    %11 = arith.mulf %9, %10 : vector<1x384xf32>
    %cst_4 = arith.constant 9.99999974E-6 : f32
    %12 = vector.broadcast %cst_4 : f32 to vector<1x384xf32>
    %13 = arith.addf %11, %12 : vector<1x384xf32>
    %14 = math.rsqrt %13 : vector<1x384xf32>
    %15 = vector.broadcast %14 : vector<1x384xf32> to vector<16x384xf32>
    %16 = arith.mulf %6, %15 : vector<16x384xf32>
    %c0_5 = arith.constant 0 : index
    %c0_6 = arith.constant 0 : index
    %17 = vector.load %arg2[%c0_5, %c0_6] : memref<16x384xf32, #tpu.memory_space<vmem>>, vector<16x384xf32>
    tpu.vector_store %arg2[%c0_5, %c0_6], %16 {strides = array<i32>} : memref<16x384xf32, #tpu.memory_space<vmem>>, vector<16x384xf32>,
    return
  }
  func.func @transform_0(%arg0: i32) -> (i32, i32) {
    %c0_i32 = arith.constant 0 : i32
    %c0_i32_0 = arith.constant 0 : i32
    return %c0_i32, %arg0 : i32, i32
  }
  func.func @transform_1(%arg0: i32) -> (i32, i32) {
    %c0_i32 = arith.constant 0 : i32
    %c0_i32_0 = arith.constant 0 : i32
    return %c0_i32, %arg0 : i32, i32
  }
}

</mosaic_0001>

<bundles_post_ra>
// kernel: tpu_custom_call.1
= control target key start
LH: loop header
LB: loop body
LE: loop exit
PB: predicated region body
PF: predicated region fallthrough
CT: control target
= control target key end

     0   :  { %6 = vsyncpa [#allocation3], 0  ;;  %s273_s0 = inlined_call_operand.hbm [shape: f32[16,384], index: 0, kind: input, shape index: {}]   ;;  %s274_s1 = inlined_call_operand.hbm [shape: f32[16,384], index: 1, kind: output, shape index: {}]  }
   0x1   :  { %7 = vsyncpa [#allocation4], 0  ;;  %s12_s8 = sshll.u32 %s273_s0, 4  ;;  %s217_s9 = smov [#allocation2]   ;;  %s13_s8 = int_to_ptr.hbm [resolvable:$true] %s12_s8 }
   0x2   :  { %s14_s10 = sshll.u32 %s217_s9, 4  ;;  %s218_s11 = smov 384   ;;  %s15_s10 = int_to_ptr.vmem [resolvable:$true] %s14_s10 }
   0x3   :  { %s219_s12 = smov 24  }
   0x4   :  { %20 = dma.hbm_to_vmem [thread:$0]  %s13_s8, 768, %s15_s10, [#allocation3], %s218_s11, %s218_s11, %s219_s12  }
   0x5   :  { %213 = dma.done.wait [#allocation3], 768  }
   0x6   :  { %214 = vsyncadd [#allocation3], 4294966528  ;;  %v25_v0 = vld [vmem:[#allocation2] sm:$0xff]  ;;  %v28_v1 = vld [vmem:[#allocation2 + $0x18] sm:$0xff]  ;;  %s220_s0 = smov [#allocation5]   ;;  %s142_s16 = sshll.u32 %s274_s1, 4  ;;  %s143_s16 = int_to_ptr.hbm [resolvable:$true] %s142_s16 }
   0x7   :  { %v26_v2 = vld [vmem:[#allocation2 + $0x8] sm:$0xff]  ;;  %v31_v3 = vadd.f32 %v28_v1, %v25_v0  ;;  %v29_v4 = vld [vmem:[#allocation2 + $0x20] sm:$0xff]  ;;  %v27_v5 = vld [vmem:[#allocation2 + $0x10] sm:$0xff]  ;;  %s140_s13 = sshll.u32 %s220_s0, 4  ;;  %s141_s13 = int_to_ptr.vmem [resolvable:$true] %s140_s13 }
   0x8   :  { %v30_v6 = vld [vmem:[#allocation2 + $0x28] sm:$0xff]  ;;  %v38_v7 = vadd.f32 %v29_v4, %v26_v2 }
   0x9   :  { %v45_v8 = vadd.f32 %v30_v6, %v27_v5  ;;  %v32_v9 = vrot.slane %v31_v3, 4 }
   0xa   :  { %v39_v10 = vrot.slane %v38_v7, 4 }
   0xb   :  { %v46_v11 = vrot.slane %v45_v8, 4  ;;  %v33_v12 = vadd.f32 %v32_v9, %v31_v3 }
   0xc   :  { %v40_v13 = vadd.f32 %v39_v10, %v38_v7 }
   0xd   :  { %v47_v14 = vadd.f32 %v46_v11, %v45_v8  ;;  %v34_v15 = vrot.slane %v33_v12, 2 }
   0xe   :  { %v41_v16 = vrot.slane %v40_v13, 2 }
   0xf   :  { %v48_v17 = vrot.slane %v47_v14, 2  ;;  %v35_v18 = vadd.f32 %v34_v15, %v33_v12 }
  0x10   :  { %v42_v19 = vadd.f32 %v41_v16, %v40_v13 }
  0x11   :  { %v49_v20 = vadd.f32 %v48_v17, %v47_v14  ;;  %v36_v21 = vrot.slane %v35_v18, 1 }
  0x12   :  { %v43_v22 = vrot.slane %v42_v19, 1 }
  0x13   :  { %v50_v23 = vrot.slane %v49_v20, 1  ;;  %v37_v24 = vadd.f32 %v36_v21, %v35_v18 }
  0x14   :  { %v44_v25 = vadd.f32 %v43_v22, %v42_v19 }
  0x15   :  { %v51_v26 = vadd.f32 %v50_v23, %v49_v20  ;;  %v52_v27 = vmul.f32 0.0625, %v37_v24 }
  0x16   :  { %v53_v28 = vmul.f32 0.0625, %v44_v25 }
  0x17   :  { %v54_v29 = vmul.f32 0.0625, %v51_v26  ;;  %v237_v30 = vsub.f32 %v25_v0, %v52_v27  ;;  %v239_v31 = vsub.f32 %v28_v1, %v52_v27 }
  0x18   :  { %v241_v32 = vsub.f32 %v26_v2, %v53_v28  ;;  %v243_v33 = vsub.f32 %v29_v4, %v53_v28 }
  0x19   :  { %v245_v34 = vsub.f32 %v27_v5, %v54_v29  ;;  %v247_v35 = vsub.f32 %v30_v6, %v54_v29  ;;  %v61_v36 = vmul.f32 %v237_v30, %v237_v30  ;;  %v64_v37 = vmul.f32 %v239_v31, %v239_v31 }
  0x1a   :  { %v62_v38 = vmul.f32 %v241_v32, %v241_v32  ;;  %v65_v39 = vmul.f32 %v243_v33, %v243_v33 }
  0x1b   :  { %v63_v40 = vmul.f32 %v245_v34, %v245_v34  ;;  %v66_v41 = vmul.f32 %v247_v35, %v247_v35  ;;  %v67_v42 = vadd.f32 %v64_v37, %v61_v36 }
  0x1c   :  { %v74_v43 = vadd.f32 %v65_v39, %v62_v38 }
  0x1d   :  { %v81_v44 = vadd.f32 %v66_v41, %v63_v40  ;;  %v68_v45 = vrot.slane %v67_v42, 4 }
  0x1e   :  { %v75_v46 = vrot.slane %v74_v43, 4 }
  0x1f   :  { %v82_v47 = vrot.slane %v81_v44, 4  ;;  %v69_v48 = vadd.f32 %v68_v45, %v67_v42 }
  0x20   :  { %v76_v49 = vadd.f32 %v75_v46, %v74_v43 }
  0x21   :  { %v83_v50 = vadd.f32 %v82_v47, %v81_v44  ;;  %v70_v51 = vrot.slane %v69_v48, 2 }
  0x22   :  { %v77_v52 = vrot.slane %v76_v49, 2 }
  0x23   :  { %v84_v53 = vrot.slane %v83_v50, 2  ;;  %v71_v54 = vadd.f32 %v70_v51, %v69_v48 }
  0x24   :  { %v78_v55 = vadd.f32 %v77_v52, %v76_v49 }
  0x25   :  { %v85_v56 = vadd.f32 %v84_v53, %v83_v50  ;;  %v72_v57 = vrot.slane %v71_v54, 1 }
  0x26   :  { %v79_v58 = vrot.slane %v78_v55, 1 }
  0x27   :  { %v86_v59 = vrot.slane %v85_v56, 1  ;;  %v73_v60 = vadd.f32 %v72_v57, %v71_v54 }
  0x28   :  { %v80_v61 = vadd.f32 %v79_v58, %v78_v55 }
  0x29   :  { %v87_v62 = vadd.f32 %v86_v59, %v85_v56  ;;  %v88_v63 = vmul.f32 0.0625, %v73_v60 }
  0x2a   :  { %v89_v0 = vmul.f32 0.0625, %v80_v61 }
  0x2b   :  { %v90_v1 = vmul.f32 0.0625, %v87_v62  ;;  %v91_v2 = vadd.f32 1e-05, %v88_v63 }
  0x2c   :  { %v92_v3 = vadd.f32 1e-05, %v89_v0 }
  0x2d   :  { %v93_v4 = vadd.f32 1e-05, %v90_v1  ;;  %159 = vrsqrt.f32 %v91_v2  ;;  %vm100_vm0 = vweird.f32 %v91_v2 }
  0x2e   :  { %161 = vrsqrt.f32 %v92_v3  ;;  %vm110_vm2 = vweird.f32 %v92_v3 }
  0x2f   :  { %163 = vrsqrt.f32 %v93_v4  ;;  %vm120_vm4 = vweird.f32 %v93_v4 }
  0x33   :  { %v160_v5 = vpop.eup %159 }
  0x34   :  { %v162_v6 = vpop.eup %161  ;;  %v95_v7 = vmul.f32 %v160_v5, %v91_v2  ;;  %vm101_vm1 = vweird.f32 %v160_v5 }
  0x35   :  { %v164_v8 = vpop.eup %163  ;;  %v105_v9 = vmul.f32 %v162_v6, %v92_v3  ;;  %vm111_vm3 = vweird.f32 %v162_v6  ;;  %vm102_vm6 = vmor %vm100_vm0, %vm101_vm1 }
  0x36   :  { %v96_v10 = vmul.f32 %v160_v5, %v95_v7  ;;  %v115_v11 = vmul.f32 %v164_v8, %v93_v4  ;;  %vm121_vm5 = vweird.f32 %v164_v8  ;;  %vm112_vm7 = vmor %vm110_vm2, %vm111_vm3 }
  0x37   :  { %v106_v12 = vmul.f32 %v162_v6, %v105_v9  ;;  %vm122_vm8 = vmor %vm120_vm4, %vm121_vm5 }
  0x38   :  { %v97_v13 = vmul.f32 0.5, %v96_v10  ;;  %v116_v14 = vmul.f32 %v164_v8, %v115_v11 }
  0x39   :  { %v107_v15 = vmul.f32 0.5, %v106_v12 }
  0x3a   :  { %v98_v16 = vsub.f32 1.5, %v97_v13  ;;  %v117_v17 = vmul.f32 0.5, %v116_v14 }
  0x3b   :  { %v108_v18 = vsub.f32 1.5, %v107_v15 }
  0x3c   :  { %v99_v19 = vmul.f32 %v160_v5, %v98_v16  ;;  %v118_v20 = vsub.f32 1.5, %v117_v17 }
  0x3d   :  { %v109_v21 = vmul.f32 %v162_v6, %v108_v18 }
  0x3e   :  { %v103_v22 = vsel %vm102_vm6, %v160_v5, %v99_v19  ;;  %v119_v23 = vmul.f32 %v164_v8, %v118_v20 }
  0x3f   :  { %v124_v24 = vmul.f32 %v103_v22, %v237_v30  ;;  %v113_v25 = vsel %vm112_vm7, %v162_v6, %v109_v21  ;;  %v127_v28 = vmul.f32 %v103_v22, %v239_v31 }
  0x40   :  { %v125_v26 = vmul.f32 %v113_v25, %v241_v32  ;;  %v123_v27 = vsel %vm122_vm8, %v164_v8, %v119_v23  ;;  %v128_v36 = vmul.f32 %v113_v25, %v243_v33 }
  0x41   :  { %130 = vst [vmem:[#allocation5] sm:$0xff] %v124_v24  ;;  %v126_v29 = vmul.f32 %v123_v27, %v245_v34  ;;  %v129_v30 = vmul.f32 %v123_v27, %v247_v35 }
  0x42   :  { %131 = vst [vmem:[#allocation5 + $0x8] sm:$0xff] %v125_v26 }
  0x43   :  { %132 = vst [vmem:[#allocation5 + $0x10] sm:$0xff] %v126_v29 }
  0x44   :  { %133 = vst [vmem:[#allocation5 + $0x18] sm:$0xff] %v127_v28 }
  0x45   :  { %134 = vst [vmem:[#allocation5 + $0x20] sm:$0xff] %v128_v36 }
  0x46   :  { %135 = vst [vmem:[#allocation5 + $0x28] sm:$0xff] %v129_v30 }
  0x47   :  { %148 = dma.vmem_to_hbm [thread:$0]  %s141_s13, 768, %s143_s16, [#allocation4], %s218_s11, %s218_s11, %s219_s12  }
  0x48   :  { %215 = dma.done.wait [#allocation4], 768  }
  0x49   :  { %216 = vsyncadd [#allocation4], 4294966528 }
  0x4a   :  { %153 = vsyncpa [#allocation3], 1 }
  0x4b   :  { %154 = vsyncpa [#allocation4], 1 }

</bundles_post_ra>
